<compile_context>
chip_gen: v7x
topology: tpu7x:2x2x1
jax: 0.10.0
libtpu: 0.0.40
codegen_flags: <defaults>
</compile_context>

<pallas_src>
import functools

import jax
import jax.numpy as jnp
from jax import lax
from jax.experimental import pallas as pl
from jax.experimental.pallas import tpu as pltpu


def _round_up(a, b):
    return (a + b - 1) // b * b


def ocsoftmax_kernel(xT_ref, w_ref, label_ref, out_ref, *,
                     alpha, r_real, r_fake, is_train):
    """Per-batch-tile OCSoftmax forward in a (D, TILE_B) lane-dense layout.

    xT_ref:    (D, TB)  features, batch on the 128-lane axis
    w_ref:     (D, 1)   L2-normalized center (resident across grid steps)
    label_ref: (1, TB)  i32 labels (0 = real/target, 1 = fake)
    out_ref:   (2, TB)  f32; row 0 = softplus(alpha*margin), row 1 = -score
    """
    x = xT_ref[...].astype(jnp.float32)          # (D, TB)
    w = w_ref[...].astype(jnp.float32)           # (D, 1) lane-broadcast (hoisted)

    # Sublane reductions instead of per-row cross-lane reductions:
    #   normalize(x) . w  ==  (x . w) * rsqrt(max(||x||^2, eps^2))
    ss = jnp.sum(x * x, axis=0, keepdims=True)               # (1, TB)
    dot = jnp.sum(x * w, axis=0, keepdims=True)              # (1, TB)
    inv = lax.rsqrt(jnp.maximum(ss, jnp.float32(1e-24)))     # EUP rsqrt
    scores = dot * inv                                       # (1, TB)

    if is_train:
        lab = label_ref[...]
        # Match PyTorch exactly: only labels 0 / 1 get the margin rewrite.
        margin = jnp.where(lab == 0,
                           jnp.float32(r_real) - scores,
                           jnp.where(lab == 1,
                                     scores - jnp.float32(r_fake),
                                     scores))
    else:
        margin = scores

    z = jnp.float32(alpha) * margin
    # Numerically stable softplus: max(z, 0) + log(1 + exp(-|z|))
    sp = jnp.maximum(z, jnp.float32(0.0)) + \
        jnp.log(jnp.float32(1.0) + jnp.exp(-jnp.abs(z)))

    out_ref[...] = jnp.concatenate([sp, -scores], axis=0)    # (2, TB)


def _choose_tile_b(B, D):
    """Lane-axis (batch) tile: big enough to beat per-grid-step overhead,
    small enough for double-buffered blocks to fit scoped VMEM, and >= 2 grid
    steps (v7x megacore) whenever the batch is large enough to split."""
    if B <= 1024:
        return B                                 # single full-extent block
    d_pad = _round_up(D, 8)
    # bytes per batch column in VMEM: x + labels + fused output, double-buffered
    bytes_per_col = 2 * 4 * (d_pad + 8 + 8)
    t = (20 << 20) // bytes_per_col              # ~20 MiB of live block buffers
    t = min(t, pl.cdiv(B, 2))                    # keep >= 2 grid steps
    t = max(128, (t // 128) * 128)               # lane-aligned
    return min(t, B)


def ocsoftmax(x, labels, center, *, r_real=0.9, r_fake=0.5, alpha=20.0,
              is_train=True):
    """x: (B, D) float (f32 or bf16), labels: (B,) int, center: (1, D) float.
    Returns (loss scalar f32, -scores of shape (B,) f32)."""
    B, D = x.shape
    assert center.shape == (1, D)

    # Normalize the single-row center once, outside the grid loop.
    c32 = center.astype(jnp.float32)
    w = c32 / jnp.maximum(jnp.sqrt(jnp.sum(c32 * c32, axis=1, keepdims=True)),
                          jnp.float32(1e-12))
    w = w.reshape(D, 1)                          # (D, 1)

    # Batch on the lane axis; keep x's original dtype (cast happens in-kernel).
    # TODO(synk): if the producer can emit (D, B) activations directly, drop
    # this transpose to save one XLA pass over x.
    xT = jnp.transpose(x)                        # (D, B)
    lab = labels.astype(jnp.int32).reshape(1, B)

    tile_b = _choose_tile_b(B, D)
    grid = (pl.cdiv(B, tile_b),)                 # trailing partial block is clipped

    kernel = functools.partial(ocsoftmax_kernel,
                               alpha=float(alpha), r_real=float(r_real),
                               r_fake=float(r_fake), is_train=bool(is_train))

    # Scoped-VMEM request from the actual (sublane/lane padded) buffers:
    # double-buffered x/labels/out blocks + resident center, plus headroom.
    lanes = _round_up(tile_b, 128)
    d_pad = _round_up(D, 8)
    need = 2 * 4 * lanes * (d_pad + 8 + 8) + 2 * 4 * 8 * 128
    vmem_limit = int(min(max(need * 5 // 4 + (2 << 20), 4 << 20), 48 << 20))

    out = pl.pallas_call(
        kernel,
        out_shape=jax.ShapeDtypeStruct((2, B), jnp.float32),
        grid_spec=pltpu.PrefetchScalarGridSpec(
            num_scalar_prefetch=0,
            grid=grid,
            in_specs=[
                pl.BlockSpec((D, tile_b), lambda i: (0, i)),   # x (transposed)
                pl.BlockSpec((D, 1), lambda i: (0, 0)),        # center (resident)
                pl.BlockSpec((1, tile_b), lambda i: (0, i)),   # labels row
            ],
            out_specs=pl.BlockSpec((2, tile_b), lambda i: (0, i)),
        ),
        compiler_params=pltpu.CompilerParams(
            dimension_semantics=("parallel",),
            vmem_limit_bytes=vmem_limit),
    )(xT, w, lab)

    # Tiny scalar reduction kept outside the kernel so the batch grid axis can
    # stay "parallel"; `out` already has exact shape (2, B) (Pallas clips the
    # trailing partial block), so no slicing is needed.
    loss = jnp.mean(out[0])
    neg_scores = out[1]
    return loss, neg_scores


if __name__ == "__main__":
    feat_dim = 2           # module default feat_dim=2
    batch = 12             # non-multiple of 8/128 to exercise full-dim blocks
    r_real, r_fake, alpha = 0.9, 0.5, 20.0

    key = jax.random.PRNGKey(0)
    k_x, k_c, k_l = jax.random.split(key, 3)

    # Deterministic stand-ins for the torch parameter init.
    center = jax.random.normal(k_c, (1, feat_dim), jnp.float32)
    x = jax.random.normal(k_x, (batch, feat_dim), jnp.float32)
    labels = jax.random.randint(k_l, (batch,), 0, 2, jnp.int32)

    loss, neg_scores = ocsoftmax(x, labels, center,
                                 r_real=r_real, r_fake=r_fake, alpha=alpha,
                                 is_train=True)
    jax.block_until_ready((loss, neg_scores))

    # Pure-JAX reference (mirrors the PyTorch forward).
    w_n = center / jnp.maximum(jnp.linalg.norm(center, axis=1, keepdims=True),
                               1e-12)
    x_n = x / jnp.maximum(jnp.linalg.norm(x, axis=1, keepdims=True), 1e-12)
    ref_scores = x_n @ w_n.T                                    # (B, 1)
    ref_margin = jnp.where(labels[:, None] == 0,
                           r_real - ref_scores, ref_scores - r_fake)
    ref_loss = jnp.mean(jax.nn.softplus(alpha * ref_margin))
    ref_neg = -ref_scores[:, 0]

    assert jnp.allclose(loss, ref_loss, atol=1e-5, rtol=1e-5), (loss, ref_loss)
    assert jnp.allclose(neg_scores, ref_neg, atol=1e-5, rtol=1e-5)

    print("KERNEL_OK")
</pallas_src>

<mosaic_0001>
module attributes {stable_mosaic.version = 11 : i64} {
  func.func @ocsoftmax_kernel(%arg0: i32, %arg1: memref<2x12xf32, #tpu.memory_space<vmem>>, %arg2: memref<2x1xf32, #tpu.memory_space<vmem>>, %arg3: memref<1x12xi32, #tpu.memory_space<vmem>>, %arg4: memref<2x12xf32, #tpu.memory_space<vmem>>) attributes {dimension_semantics = [#tpu.dimension_semantics<parallel>], iteration_bounds = array<i64: 1>, scalar_prefetch = 0 : i64, scratch_operands = 0 : i64, tpu.core_type = #tpu.core_type<tc>, window_params = [{transform_indices = @transform_0, window_bounds = array<i64: 2, 12>}, {pipeline_mode = #tpu.pipeline_mode<synchronous>, transform_indices = @transform_1, window_bounds = array<i64: 2, 1>}, {transform_indices = @transform_2, window_bounds = array<i64: 1, 12>}, {transform_indices = @transform_3, window_bounds = array<i64: 2, 12>}]} {
    %c0 = arith.constant 0 : index
    %c0_0 = arith.constant 0 : index
    %0 = vector.load %arg1[%c0, %c0_0] : memref<2x12xf32, #tpu.memory_space<vmem>>, vector<2x12xf32>
    %c0_1 = arith.constant 0 : index
    %c0_2 = arith.constant 0 : index
    %1 = vector.load %arg2[%c0_1, %c0_2] : memref<2x1xf32, #tpu.memory_space<vmem>>, vector<2x1xf32>
    %2 = arith.mulf %0, %0 : vector<2x12xf32>
    %cst = arith.constant dense<0.000000e+00> : vector<12xf32>
    %3 = vector.multi_reduction <add>, %2, %cst [0] : vector<2x12xf32> to vector<12xf32>
    %4 = vector.shape_cast %3 : vector<12xf32> to vector<1x12xf32>
    %5 = vector.broadcast %1 : vector<2x1xf32> to vector<2x12xf32>
    %6 = arith.mulf %0, %5 : vector<2x12xf32>
    %cst_3 = arith.constant dense<0.000000e+00> : vector<12xf32>
    %7 = vector.multi_reduction <add>, %6, %cst_3 [0] : vector<2x12xf32> to vector<12xf32>
    %8 = vector.shape_cast %7 : vector<12xf32> to vector<1x12xf32>
    %cst_4 = arith.constant 1.000000e-24 : f32
    %9 = vector.broadcast %cst_4 : f32 to vector<1x12xf32>
    %10 = arith.maximumf %4, %9 : vector<1x12xf32>
    %11 = math.rsqrt %10 : vector<1x12xf32>
    %12 = arith.mulf %8, %11 : vector<1x12xf32>
    %c0_5 = arith.constant 0 : index
    %c0_6 = arith.constant 0 : index
    %13 = vector.load %arg3[%c0_5, %c0_6] : memref<1x12xi32, #tpu.memory_space<vmem>>, vector<1x12xi32>
    %c0_i32 = arith.constant 0 : i32
    %14 = vector.broadcast %c0_i32 : i32 to vector<1x12xi32>
    %15 = arith.cmpi eq, %13, %14 : vector<1x12xi32>
    %cst_7 = arith.constant 0.899999976 : f32
    %16 = vector.broadcast %cst_7 : f32 to vector<1x12xf32>
    %17 = arith.subf %16, %12 : vector<1x12xf32>
    %c1_i32 = arith.constant 1 : i32
    %18 = vector.broadcast %c1_i32 : i32 to vector<1x12xi32>
    %19 = arith.cmpi eq, %13, %18 : vector<1x12xi32>
    %cst_8 = arith.constant 5.000000e-01 : f32
    %20 = vector.broadcast %cst_8 : f32 to vector<1x12xf32>
    %21 = arith.subf %12, %20 : vector<1x12xf32>
    %22 = arith.select %19, %21, %12 : vector<1x12xi1>, vector<1x12xf32>
    %23 = arith.select %15, %17, %22 : vector<1x12xi1>, vector<1x12xf32>
    %cst_9 = arith.constant 2.000000e+01 : f32
    %24 = vector.broadcast %cst_9 : f32 to vector<1x12xf32>
    %25 = arith.mulf %24, %23 : vector<1x12xf32>
    %cst_10 = arith.constant 0.000000e+00 : f32
    %26 = vector.broadcast %cst_10 : f32 to vector<1x12xf32>
    %27 = arith.maximumf %25, %26 : vector<1x12xf32>
    %28 = math.absf %25 : vector<1x12xf32>
    %cst_11 = arith.constant 0.000000e+00 : f32
    %29 = vector.broadcast %cst_11 : f32 to vector<1x12xf32>
    %30 = arith.subf %29, %28 : vector<1x12xf32>
    %31 = math.exp %30 : vector<1x12xf32>
    %cst_12 = arith.constant 1.000000e+00 : f32
    %32 = vector.broadcast %cst_12 : f32 to vector<1x12xf32>
    %33 = arith.addf %32, %31 : vector<1x12xf32>
    %34 = math.log %33 : vector<1x12xf32>
    %35 = arith.addf %27, %34 : vector<1x12xf32>
    %cst_13 = arith.constant 0.000000e+00 : f32
    %36 = vector.broadcast %cst_13 : f32 to vector<1x12xf32>
    %37 = arith.subf %36, %12 : vector<1x12xf32>
    %38 = tpu.concatenate %35, %37 in 0 : vector<1x12xf32>, vector<1x12xf32> -> vector<2x12xf32>
    %c0_14 = arith.constant 0 : index
    %c0_15 = arith.constant 0 : index
    %39 = vector.load %arg4[%c0_14, %c0_15] : memref<2x12xf32, #tpu.memory_space<vmem>>, vector<2x12xf32>
    tpu.vector_store %arg4[%c0_14, %c0_15], %38 {strides = array<i32>} : memref<2x12xf32, #tpu.memory_space<vmem>>, vector<2x12xf32>,
    return
  }
  func.func @transform_0(%arg0: i32) -> (i32, i32) {
    %c0_i32 = arith.constant 0 : i32
    %c0_i32_0 = arith.constant 0 : i32
    return %c0_i32, %arg0 : i32, i32
  }
  func.func @transform_1(%arg0: i32) -> (i32, i32) {
    %c0_i32 = arith.constant 0 : i32
    %c0_i32_0 = arith.constant 0 : i32
    %c0_i32_1 = arith.constant 0 : i32
    return %c0_i32, %c0_i32_0 : i32, i32
  }
  func.func @transform_2(%arg0: i32) -> (i32, i32) {
    %c0_i32 = arith.constant 0 : i32
    %c0_i32_0 = arith.constant 0 : i32
    return %c0_i32, %arg0 : i32, i32
  }
  func.func @transform_3(%arg0: i32) -> (i32, i32) {
    %c0_i32 = arith.constant 0 : i32
    %c0_i32_0 = arith.constant 0 : i32
    return %c0_i32, %arg0 : i32, i32
  }
}

</mosaic_0001>

<bundles_post_ra>
// kernel: tpu_custom_call.1
= control target key start
LH: loop header
LB: loop body
LE: loop exit
PB: predicated region body
PF: predicated region fallthrough
CT: control target
= control target key end

     0   :  { %v111_v1 = vmov 0   ;;  %s157_s0 = inlined_call_operand.vmem [shape: f32[2,12], index: 0, kind: input, shape index: {}]   ;;  %s158_s1 = inlined_call_operand.vmem [shape: f32[2,1], index: 1, kind: input, shape index: {}]   ;;  %s159_s2 = inlined_call_operand.vmem [shape: s32[1,12], index: 2, kind: input, shape index: {}]   ;;  %s160_s3 = inlined_call_operand.hbm [shape: f32[2,12], index: 3, kind: output, shape index: {}]  }
   0x1   :  { %v16_v0 = vld [vmem:[%s158_s1] sm:$0x3]  ;;  %80 = vset.pattern.permute.xlu0 %v111_v1 }
   0x2   :  { %8 = vsyncpa [#allocation3], 0  ;;  %28 = vperm.xlu0 %80, %v16_v0   ;;  %v15_v2 = vld [vmem:[%s157_s0] sm:$0x3]  ;;  %vm18_vm0 = vcmask 91136   ;;  %s112_s16 = smov [#allocation2]  }
   0x3   :  { %v17_v3 = vmul.f32 %v15_v2, %v15_v2  ;;  %v42_v22 = vld [vmem:[%s159_s2] sm:$0x1]  ;;  %s69_s2 = sshll.u32 %s112_s16, 4  ;;  %vm60_vm3 = vcmask 1040384   ;;  %s70_s2 = int_to_ptr.vmem [resolvable:$true] %s69_s2 }
   0x4   :  { %vm45_vm1 = vcmp.eq.s32.totalorder %v42_v22, 1  ;;  %vm43_vm2 = vcmp.eq.s32.totalorder %v42_v22, 0  ;;  %s87_s17 = scalar_lea.vmem %s70_s2, 32  ;;  %p92_p1 = scmp.lt.s32.totalorder %s70_s2, %s70_s2 }
   0x5   :  { %v19_v4 = vsel %vm18_vm0, %v17_v3, 0.0  ;;  %p88_p0 = scmp.ne.s32.totalorder %s70_s2, %s87_s17  ;;  %p93_p2 = scmp.lt.s32.totalorder %s87_s17, %s87_s17 }
   0x6   :  { %v20_v5 = vrot.slane %v19_v4, 4 }
   0x7   :  { %p94_p3 = por %p93_p2, %p92_p1 }
   0x8   :  { %v21_v6 = vadd.f32 %v20_v5, %v19_v4 }
   0x9   :  { %p95_p4 = pnand %p94_p3, %p88_p0 }
   0xa   :  { %v22_v7 = vrot.slane %v21_v6, 2 }
   0xc   :  { %v23_v8 = vadd.f32 %v22_v7, %v21_v6 }
   0xe   :  { %v24_v9 = vrot.slane %v23_v8, 1 }
  0x10   :  { %v25_v10 = vadd.f32 %v24_v9, %v23_v8 }
  0x12   :  { %v39_v11 = vmax.f32 %v25_v10, 1e-24 }
  0x14   :  { %81 = vrsqrt.f32 %v39_v11 }
  0x1e   :  { %v82_v20 = vpop.eup %81 }
  0x81   :  { %v29_v12 = vpop.permute.xlu0 %28 }
  0x82   :  { %v31_v13 = vmul.f32 %v29_v12, %v15_v2 }
  0x84   :  { %v32_v14 = vsel %vm18_vm0, %v31_v13, 0.0 }
  0x85   :  { %v33_v15 = vrot.slane %v32_v14, 4 }
  0x87   :  { %v34_v16 = vadd.f32 %v33_v15, %v32_v14 }
  0x89   :  { %v35_v17 = vrot.slane %v34_v16, 2 }
  0x8b   :  { %v36_v18 = vadd.f32 %v35_v17, %v34_v16 }
  0x8d   :  { %v37_v19 = vrot.slane %v36_v18, 1 }
  0x8f   :  { %v38_v21 = vadd.f32 %v37_v19, %v36_v18 }
  0x91   :  { %v41_v23 = vmul.f32 %v82_v20, %v38_v21 }
  0x93   :  { %v77_v24 = vadd.f32 -0.5, %v41_v23  ;;  %v44_v25 = vsub.f32 0.9, %v41_v23  ;;  %v59_v38 = vsub.f32 0.0, %v41_v23 }
  0x95   :  { %v47_v26 = vsel %vm45_vm1, %v77_v24, %v41_v23 }
  0x96   :  { %v48_v27 = vsel %vm43_vm2, %v44_v25, %v47_v26 }
  0x97   :  { %v49_v28 = vmul.f32 20.0, %v48_v27 }
  0x99   :  { %v51_v29 = vand.u32 2147483647, %v49_v28  ;;  %v50_v35 = vmax.f32 %v49_v28, 0.0 }
  0x9b   :  { %v52_v30 = vsub.f32 0.0, %v51_v29 }
  0x9d   :  { %v53_v31 = vmul.f32 1.442695, %v52_v30 }
  0x9f   :  { %83 = vpow2.f32 %v53_v31 }
  0xa9   :  { %v84_v32 = vpop.eup %83 }
  0xaa   :  { %v55_v33 = vadd.f32 1.0, %v84_v32 }
  0xac   :  { %85 = vlog2.f32 %v55_v33 }
  0xb6   :  { %v86_v34 = vpop.eup %85 }
  0xb7   :  { %v57_v36 = vmul.f32 0.6931472, %v86_v34 }
  0xb9   :  { %v58_v37 = vadd.f32 %v57_v36, %v50_v35 }
  0xbb   :  { %v61_v39 = vsel %vm60_vm3, %v58_v37, %v59_v38 }
  0xbc   :  { %62 = vst.msk [vmem:[#allocation2] sm:$0x3] %vm18_vm0, %v61_v39 }
  0xbd   :  { %98 = shalt.err (!%p95_p4)
}
  0xbe   :  { %s99_s20 = scalar_lea.hbm %s160_s3, 32 }
  0xbf   :  { %p100_p5 = scmp.ne.s32.totalorder %s160_s3, %s99_s20  ;;  %p103_p6 = scmp.lt.u32.totalorder %s99_s20, %s160_s3 }
  0xc1   :  { %p105_p7 = pnand %p103_p6, %p100_p5 }
  0xc3   :  { %108 = shalt.err (!%p105_p7)
}
  0xc4   :  { %72 = dma.vmem_to_hbm [thread:$0]  %s70_s2, 32, %s160_s3, [#allocation3]  }
  0xc5   :  { %109 = dma.done.wait [#allocation3], 32  }
  0xc6   :  { %110 = vsyncadd [#allocation3], 4294967264 }
  0xc7   :  { %76 = vsyncpa [#allocation3], 1 }

</bundles_post_ra>
